<compile_context>
chip_gen: v7x
topology: tpu7x:2x2x1
jax: 0.10.0
libtpu: 0.0.40
codegen_flags: <defaults>
</compile_context>

<pallas_src>
import jax
import jax.numpy as jnp
from jax.experimental import pallas as pl
from jax.experimental.pallas import tpu as pltpu


_LANES = 128

_TILE_BYTES_CACHE = None
_GRID_SEMANTICS_CACHE = None


def _copy_kernel(x_ref, o_ref):
    # Pure identity copy of the current tile (the whole "compute" of a view).
    o_ref[...] = x_ref[...]


def _resolve_size(numel, size):
    """PyTorch-style view size resolution (supports a single -1)."""
    size = tuple(int(s) for s in size)
    if size.count(-1) > 1:
        raise ValueError("only one dimension can be inferred (-1)")
    if -1 in size:
        known = 1
        for s in size:
            if s != -1:
                known *= s
        if known == 0 or numel % known != 0:
            raise ValueError(f"cannot view {numel} elements as {size}")
        size = tuple(numel // known if s == -1 else s for s in size)
    prod = 1
    for s in size:
        prod *= s
    if prod != numel:
        raise ValueError(f"shape {size} is invalid for input with {numel} elements")
    return size


def _sublane_multiple(dtype):
    """Native sublane packing (rows per packed vreg): 8 f32, 16 bf16, 32 int8."""
    itemsize = jnp.dtype(dtype).itemsize
    return max(8, 32 // max(itemsize, 1))


def _target_tile_bytes():
    """Per-block byte budget for the streaming copy.

    ~4 MiB/step: data time (~2.6 us at v7x's 3.2 TB/s, ~3 us v6e, ~5 us v5e)
    dwarfs the ~0.35 us per-grid-step overhead -> ~88-94% of HBM roofline.
    Double-buffered in+out working set is ~16 MiB, kept legal everywhere via
    the explicit 32 MiB vmem_limit in the pallas_call below.
    """
    global _TILE_BYTES_CACHE
    if _TILE_BYTES_CACHE is not None:
        return _TILE_BYTES_CACHE
    target = 4 << 20
    try:
        vmem = getattr(pltpu.get_tpu_info(), "vmem_capacity_bytes", None)
        if vmem:
            # Keep the 4-buffer working set within ~1/4 of physical VMEM
            # (v7x: 64 MiB -> 4 MiB tiles; v5e/v6e: 128 MiB -> capped at 4 MiB).
            target = min(target, max(1 << 20, vmem // 16))
    except Exception:  # non-TPU backend / older jax: keep the static default
        pass
    _TILE_BYTES_CACHE = target
    return target


def _grid_semantics():
    """Prefer CORE_PARALLEL (shards the copy across v7x's 2 TensorCores);
    fall back to PARALLEL where unsupported.  Probed once with a tiny concrete
    kernel so the cached choice also holds under later jit tracing."""
    global _GRID_SEMANTICS_CACHE
    if _GRID_SEMANTICS_CACHE is not None:
        return _GRID_SEMANTICS_CACHE
    probe = jnp.arange(24 * _LANES, dtype=jnp.float32).reshape(24, _LANES)
    for sem in (getattr(pltpu, "CORE_PARALLEL", None), pltpu.PARALLEL):
        if sem is None:
            continue
        try:
            out = pl.pallas_call(
                _copy_kernel,
                out_shape=jax.ShapeDtypeStruct(probe.shape, probe.dtype),
                grid_spec=pltpu.PrefetchScalarGridSpec(
                    num_scalar_prefetch=0,
                    grid=(3,),
                    in_specs=[pl.BlockSpec((8, _LANES), lambda i: (i, 0))],
                    out_specs=pl.BlockSpec((8, _LANES), lambda i: (i, 0)),
                ),
                compiler_params=pltpu.CompilerParams(dimension_semantics=(sem,)),
            )(probe)
            jax.block_until_ready(out)
            if not bool(jnp.array_equal(out, probe)):
                continue
            _GRID_SEMANTICS_CACHE = sem
            return sem
        except Exception:
            continue
    _GRID_SEMANTICS_CACHE = "parallel"
    return _GRID_SEMANTICS_CACHE


def _tiled_copy(x2d):
    """Pipelined identity copy of a lane-dense (rows, 128) slab."""
    rows, lanes = x2d.shape
    itemsize = jnp.dtype(x2d.dtype).itemsize
    sub = _sublane_multiple(x2d.dtype)

    tile_bytes = _target_tile_bytes()
    max_rows = max(sub, (tile_bytes // (lanes * itemsize)) // sub * sub)
    if rows <= max_rows:
        # Single block equal to the full array shape (always a legal block).
        tile_rows = rows
    else:
        # Sublane-aligned multi-block tiling; Pallas clips the partial last
        # block (one masked store) so no wrapper-side padding is needed.
        tile_rows = max_rows
    grid = (pl.cdiv(rows, tile_rows),)

    bytes_accessed = 2 * rows * lanes * itemsize  # read + write
    return pl.pallas_call(
        _copy_kernel,
        out_shape=jax.ShapeDtypeStruct((rows, lanes), x2d.dtype),
        grid_spec=pltpu.PrefetchScalarGridSpec(
            num_scalar_prefetch=0,
            grid=grid,
            in_specs=[pl.BlockSpec((tile_rows, lanes), lambda i: (i, 0))],
            out_specs=pl.BlockSpec((tile_rows, lanes), lambda i: (i, 0)),
        ),
        compiler_params=pltpu.CompilerParams(
            dimension_semantics=(_grid_semantics(),),
            # 4 MiB tiles, double-buffered in+out ~= 16 MiB; 32 MiB scoped
            # limit is safe on v5e/v6e (128 MiB physical) and v7x (64 MiB).
            vmem_limit_bytes=32 << 20,
        ),
        cost_estimate=pl.CostEstimate(
            flops=0, transcendentals=0, bytes_accessed=bytes_accessed
        ),
    )(x2d)


def _materialized_copy(x, out_size):
    """Fresh-buffer copy of `x`, reshaped to `out_size`, via the Pallas kernel."""
    flat = jnp.reshape(x, (-1,))
    numel = flat.size
    rows = numel // _LANES
    rem = numel - rows * _LANES

    if rows == 0:
        # Less than one lane row: nothing useful for the vector units to do.
        return jnp.reshape(flat, out_size)
    if rem == 0:
        return _tiled_copy(flat.reshape(rows, _LANES)).reshape(out_size)

    # Ragged tail (<128 elements): kernel copies the aligned prefix, plain JAX
    # stitches the tiny tail.  (Replaces the old whole-array pad + slice.)
    head = _tiled_copy(flat[: rows * _LANES].reshape(rows, _LANES)).reshape(-1)
    return jnp.concatenate([head, flat[rows * _LANES:]]).reshape(out_size)


def view_pallas(x, size, *, materialize=False):
    """Equivalent of torch `tensor.view(size)`.

    Default path is metadata-only (`jnp.reshape`), matching torch.view's
    zero-copy semantics on contiguous tensors.  `materialize=True` routes the
    data through the Pallas streaming-copy kernel to produce a fresh buffer.
    """
    numel = x.size
    out_size = _resolve_size(numel, size)
    if numel == 0 or not materialize:
        return jnp.reshape(x, out_size)
    return _materialized_copy(x, out_size)


class ViewPallas:
    """Mirror of the PyTorch View module (no parameters)."""

    def __init__(self, size, materialize=False):
        self.size = size
        self.materialize = materialize

    def __call__(self, tensor):
        return view_pallas(tensor, self.size, materialize=self.materialize)


if __name__ == "__main__":
    key = jax.random.PRNGKey(0)

    # NCHW activations as a VAE encoder conv stack would produce before the
    # FC head flattens them: View((-1, C*H*W)).
    x = jax.random.normal(key, (2, 4, 16, 16), dtype=jnp.float32)
    ref = x.reshape(-1, 4 * 16 * 16)

    # Default path: metadata-only, exactly torch.view semantics.
    out = jax.block_until_ready(ViewPallas((-1, 4 * 16 * 16))(x))
    assert out.shape == (2, 4 * 16 * 16) and out.dtype == x.dtype
    assert bool(jnp.array_equal(out, ref))

    # Materialized path: same result through the Pallas streaming-copy kernel.
    out_k = jax.block_until_ready(
        ViewPallas((-1, 4 * 16 * 16), materialize=True)(x)
    )
    assert out_k.shape == (2, 4 * 16 * 16) and out_k.dtype == x.dtype
    assert bool(jnp.array_equal(out_k, ref))

    # bf16 through the kernel (sublane packing = 16).
    xb = x.astype(jnp.bfloat16)
    outb = jax.block_until_ready(ViewPallas((2, -1), materialize=True)(xb))
    assert outb.shape == (2, 4 * 16 * 16)
    assert bool(jnp.array_equal(outb, xb.reshape(2, -1)))

    # Ragged element count (numel % 128 != 0): kernel copies the 128-aligned
    # prefix, plain JAX stitches the <128-element tail.
    xr = jax.random.normal(key, (5, 7, 13), dtype=jnp.float32)  # 455 elements
    outr = jax.block_until_ready(ViewPallas((-1,), materialize=True)(xr))
    assert outr.shape == (455,)
    assert bool(jnp.array_equal(outr, xr.reshape(-1)))

    # Ragged + default path (metadata-only).
    outr2 = jax.block_until_ready(ViewPallas((7, -1))(xr))
    assert outr2.shape == (7, 65)
    assert bool(jnp.array_equal(outr2, xr.reshape(7, -1)))

    print("KERNEL_OK")
</pallas_src>

<mosaic_0001>
module attributes {stable_mosaic.version = 11 : i64} {
  func.func @_copy_kernel(%arg0: i32, %arg1: memref<8x128xf32, #tpu.memory_space<vmem>>, %arg2: memref<8x128xf32, #tpu.memory_space<vmem>>) attributes {dimension_semantics = [#tpu.dimension_semantics<core_parallel>], iteration_bounds = array<i64: 3>, scalar_prefetch = 0 : i64, scratch_operands = 0 : i64, tpu.core_type = #tpu.core_type<tc>, window_params = [{transform_indices = @transform_0, window_bounds = array<i64: 8, 128>}, {transform_indices = @transform_1, window_bounds = array<i64: 8, 128>}]} {
    %c0 = arith.constant 0 : index
    %c0_0 = arith.constant 0 : index
    %0 = vector.load %arg1[%c0, %c0_0] : memref<8x128xf32, #tpu.memory_space<vmem>>, vector<8x128xf32>
    %c0_1 = arith.constant 0 : index
    %c0_2 = arith.constant 0 : index
    %1 = vector.load %arg2[%c0_1, %c0_2] : memref<8x128xf32, #tpu.memory_space<vmem>>, vector<8x128xf32>
    tpu.vector_store %arg2[%c0_1, %c0_2], %0 {strides = array<i32>} : memref<8x128xf32, #tpu.memory_space<vmem>>, vector<8x128xf32>,
    return
  }
  func.func @transform_0(%arg0: i32) -> (i32, i32) {
    %c0_i32 = arith.constant 0 : i32
    %c0_i32_0 = arith.constant 0 : i32
    return %arg0, %c0_i32 : i32, i32
  }
  func.func @transform_1(%arg0: i32) -> (i32, i32) {
    %c0_i32 = arith.constant 0 : i32
    %c0_i32_0 = arith.constant 0 : i32
    return %arg0, %c0_i32 : i32, i32
  }
}

module attributes {stable_mosaic.version = 11 : i64} {
  func.func @_copy_kernel(%arg0: i32, %arg1: memref<8x128xf32, #tpu.memory_space<vmem>>, %arg2: memref<8x128xf32, #tpu.memory_space<vmem>>) attributes {dimension_semantics = [#tpu.dimension_semantics<parallel>], iteration_bounds = array<i64: 3>, scalar_prefetch = 0 : i64, scratch_operands = 0 : i64, tpu.core_type = #tpu.core_type<tc>, window_params = [{transform_indices = @transform_0, window_bounds = array<i64: 8, 128>}, {transform_indices = @transform_1, window_bounds = array<i64: 8, 128>}]} {
    %c0 = arith.constant 0 : index
    %c0_0 = arith.constant 0 : index
    %0 = vector.load %arg1[%c0, %c0_0] : memref<8x128xf32, #tpu.memory_space<vmem>>, vector<8x128xf32>
    %c0_1 = arith.constant 0 : index
    %c0_2 = arith.constant 0 : index
    %1 = vector.load %arg2[%c0_1, %c0_2] : memref<8x128xf32, #tpu.memory_space<vmem>>, vector<8x128xf32>
    tpu.vector_store %arg2[%c0_1, %c0_2], %0 {strides = array<i32>} : memref<8x128xf32, #tpu.memory_space<vmem>>, vector<8x128xf32>,
    return
  }
  func.func @transform_0(%arg0: i32) -> (i32, i32) {
    %c0_i32 = arith.constant 0 : i32
    %c0_i32_0 = arith.constant 0 : i32
    return %arg0, %c0_i32 : i32, i32
  }
  func.func @transform_1(%arg0: i32) -> (i32, i32) {
    %c0_i32 = arith.constant 0 : i32
    %c0_i32_0 = arith.constant 0 : i32
    return %arg0, %c0_i32 : i32, i32
  }
}

module attributes {stable_mosaic.version = 11 : i64} {
  func.func @_copy_kernel(%arg0: i32, %arg1: memref<16x128xf32, #tpu.memory_space<vmem>>, %arg2: memref<16x128xf32, #tpu.memory_space<vmem>>) attributes {dimension_semantics = [#tpu.dimension_semantics<parallel>], iteration_bounds = array<i64: 1>, scalar_prefetch = 0 : i64, scratch_operands = 0 : i64, tpu.core_type = #tpu.core_type<tc>, window_params = [{transform_indices = @transform_0, window_bounds = array<i64: 16, 128>}, {transform_indices = @transform_1, window_bounds = array<i64: 16, 128>}]} {
    %c0 = arith.constant 0 : index
    %c0_0 = arith.constant 0 : index
    %0 = vector.load %arg1[%c0, %c0_0] : memref<16x128xf32, #tpu.memory_space<vmem>>, vector<16x128xf32>
    %c0_1 = arith.constant 0 : index
    %c0_2 = arith.constant 0 : index
    %1 = vector.load %arg2[%c0_1, %c0_2] : memref<16x128xf32, #tpu.memory_space<vmem>>, vector<16x128xf32>
    tpu.vector_store %arg2[%c0_1, %c0_2], %0 {strides = array<i32>} : memref<16x128xf32, #tpu.memory_space<vmem>>, vector<16x128xf32>,
    return
  }
  func.func @transform_0(%arg0: i32) -> (i32, i32) {
    %c0_i32 = arith.constant 0 : i32
    %c0_i32_0 = arith.constant 0 : i32
    return %arg0, %c0_i32 : i32, i32
  }
  func.func @transform_1(%arg0: i32) -> (i32, i32) {
    %c0_i32 = arith.constant 0 : i32
    %c0_i32_0 = arith.constant 0 : i32
    return %arg0, %c0_i32 : i32, i32
  }
}

</mosaic_0001>

<bundles_post_ra>
// kernel: tpu_custom_call.1
= control target key start
LH: loop header
LB: loop body
LE: loop exit
PB: predicated region body
PF: predicated region fallthrough
CT: control target
= control target key end

     0   :  { %6 = vsyncpa [#allocation3], 0  ;;  %s545_s0 = inlined_call_operand.hbm [shape: f32[24,128], index: 0, kind: input, shape index: {}]   ;;  %s546_s1 = inlined_call_operand.hbm [shape: f32[24,128], index: 1, kind: output, shape index: {}]  }
   0x1   :  { %8 = vsyncpa [#allocation3 + $0x1], 0 }
   0x2   :  { %9 = vsyncpa [#allocation4], 0 }
   0x3   :  { %11 = vsyncpa [#allocation4 + $0x1], 0  ;;  %s386_s6 = smov 0   ;;  %s388_s7 = smov 0  }
   0x4   :  { %s390_s8 = smov 0   ;;  %s392_s9 = smov 0  }
   0x5 LB: > { %s407_s10 = sadd.s32 4294967295, %s372_s9   ;;  %s218_s11 = sadd.s32 4294967294, %s372_s9   ;;  %s372_s9 = sphi %s392_s9, %s560_s9   ;;  %s368_s8 = sphi %s390_s8, %s559_s8   ;;  %s364_s7 = sphi %s388_s7, %s558_s7   ;;  %s360_s6 = sphi %s386_s6, %s557_s6  }
   0x6   : > { %s411_s12 = sadd.s32 1, %s372_s9   ;;  %s24_s13 = sadd.s32 1, %s368_s8 }
   0x7   : > { %s21_s14 = ssub.s32 %s372_s9, %s411_s12  ;;  %p31_p0 = scmp.ne.s32.totalorder %s368_s8, %s364_s7 }
   0x8   : > { %p22_p1 = scmp.eq.s32.totalorder %s21_s14, 0  ;;  %p32_p2 = scmp.eq.s32.totalorder %s372_s9, 0 }
   0x9   : > { %p37_p3 = scmp.ne.s32.totalorder %s364_s7, %s360_s6  ;;  %p38_p4 = scmp.eq.s32.totalorder %s407_s10, 0 }
   0xa   : > { %s423_s15 = scalar_select %p22_p1, %s368_s8, %s24_s13  }
   0xb   : > { %p425_p5 = por %p32_p2, %p31_p0  ;;  %p429_p6 = por %p38_p4, %p37_p3 }
   0xc   : > { %p61_p7 = scmp.eq.s32.totalorder %s407_s10, 2  ;;  %p67_p8 = scmp.eq.s32.totalorder %s218_s11, 2 }
   0xd   : > { %p242_p9 = scmp.lt.s32.totalorder %s372_s9, 3  ;;  %s87_s20 = sand.u32 1, %s368_s8  }
   0xe   : > { %p435_p10 = por %p61_p7, %p31_p0  ;;  %p439_p11 = por %p67_p8, %p37_p3 }
   0xf   : > { %s222_s21 = sshll.u32 %s372_s9, 7  ;;  %s221_s22 = sshll.u32 %s87_s20, 3 }
  0x10   : > { %s550_s18 = scalar_select %p435_p10, 1, 0 }
  0x11   : > { %s551_s19 = scalar_select %p439_p11, 1, 0 }
  0x12   : > { %s448_s25 = scalar_lea.hbm %s545_s0, %s222_s21  ;;  %s91_s26 = scalar_lea.vmem [#allocation2], %s221_s22 }
  0x13   : > { %s98_s27 = sshll.u32 %s91_s26, 4  ;;  %p452_p12 = pnand %p242_p9, %p425_p5  ;;  %s456_s27 = int_to_ptr.vmem [resolvable:$true] %s98_s27 }
  0x14   : > { %s88_s29 = scalar_lea.sflag [#allocation3], %s87_s20  ;;  %s276_s30 = scalar_lea.hbm %s448_s25, 128 }
  0x15   : > { %p277_p1 = scmp.ne.s32.totalorder %s448_s25, %s276_s30  ;;  %p278_p2 = pneg %p452_p12 }
  0x16   : > { %s281_s4 = scalar_lea.hbm %s545_s0, 384  ;;  %p282_p5 = scmp.lt.u32.totalorder %s448_s25, %s545_s0 }
  0x17   : > { %p279_p3 = pnand %p278_p2, %p277_p1  ;;  %p283_p7 = scmp.lt.u32.totalorder %s281_s4, %s276_s30 }
  0x18   : > { %p285_p9 = scmp.lt.u32.totalorder %s276_s30, %s448_s25 }
  0x19   : > { %p280_p4 = pneg %p279_p3  ;;  %p284_p8 = por %p283_p7, %p282_p5 }
  0x1b   : > { %p286_p13 = por %p285_p9, %p284_p8 }
  0x1d   : > { %p287_p0 = pnand %p286_p13, %p280_p4 }
  0x1f   : > { %290 = shalt.err (!%p287_p0)
}
  0x20   : > { %s291_s13 = scalar_lea.vmem %s456_s27, 128  ;;  %s374_s14 = smov [#allocation2]  }
  0x21   : > { %p292_p1 = scmp.ne.s32.totalorder %s456_s27, %s291_s13  ;;  %s296_s16 = sshll.u32 %s374_s14, 4  ;;  %s297_s16 = int_to_ptr.vmem [resolvable:$false] %s296_s16 }
  0x22   : > { %s298_s20 = scalar_lea.vmem %s297_s16, 256  ;;  %p299_p10 = scmp.lt.s32.totalorder %s456_s27, %s297_s16 }
  0x23   : > { %p294_p3 = pnand %p292_p1, %p278_p2  ;;  %p300_p5 = scmp.lt.s32.totalorder %s298_s20, %s291_s13 }
  0x25   : > { %p295_p11 = pneg %p294_p3  ;;  %p301_p7 = por %p300_p5, %p299_p10 }
  0x27   : > { %p302_p8 = pnand %p301_p7, %p295_p11 }
  0x29   : > { %305 = shalt.err (!%p302_p8)
}
  0x2a   : > { %237 = dma.hbm_to_vmem [thread:$0]  (!%p452_p12), %s448_s25, 128, %s456_s27, %s88_s29  }
  0x2b   : > { %p553_p13 = scmp.lt.s32.totalorder %s372_s9, 4  ;;  %p554_p0 = scmp.ge.s32.totalorder %s372_s9, 1 }
  0x2d   : > { %p104_p2 = pnand %p554_p0, %p553_p13 }
  0x2e   : > { %s490_s21 = sand.u32 (!%p104_p2), 1, %s364_s7  }
  0x2f   : > { %107 = sbr.rel (%p104_p2) target bundleno = 81 (0x51), region = 24  ;;  %s224_s22 = sshll.u32 (!%p104_p2), %s490_s21, 3 }
  0x30   : > { %s110_s23 = scalar_lea.sflag (!%p104_p2), [#allocation3], %s490_s21  ;;  %s113_s24 = scalar_lea.vmem (!%p104_p2), [#allocation2], %s224_s22 }
  0x36   : > { %351 = dma.done.wait (%p429_p6), %s110_s23, 128  }
  0x37   : > { %353 = vsyncadd (%p429_p6), %s110_s23, 4294967168  ;;  %s131_s25 = scalar_lea.vmem [#allocation5], %s224_s22  ;;  %s227_s27 = sshll.u32 %s407_s10, 7  ;;  %v132_v0 = vld [vmem:[%s113_s24] sm:$0xff] }
  0x38   : > { %s148_s26 = sshll.u32 %s131_s25, 4  ;;  %s504_s30 = scalar_lea.hbm %s546_s1, %s227_s27  ;;  %133 = vst [vmem:[%s131_s25] sm:$0xff] %v132_v0  ;;  %s499_s26 = int_to_ptr.vmem [resolvable:$true] %s148_s26 }
  0x39   : > { %s135_s17 = scalar_lea.sflag [#allocation4], %s490_s21  ;;  %s306_s2 = scalar_lea.vmem %s499_s26, 128 }
  0x3a   : > { %p307_p6 = scmp.ne.s32.totalorder %s499_s26, %s306_s2  ;;  %p555_p10 = scmp.ne.s32.totalorder %s550_s18, 0 }
  0x3b   : > { %s375_s3 = smov [#allocation5]  }
  0x3c   : > { %p308_p11 = pnand %p307_p6, %p555_p10  ;;  %s310_s10 = sshll.u32 %s375_s3, 4  ;;  %s311_s10 = int_to_ptr.vmem [resolvable:$false] %s310_s10 }
  0x3d   : > { %s312_s4 = scalar_lea.vmem %s311_s10, 256  ;;  %p313_p4 = scmp.lt.s32.totalorder %s499_s26, %s311_s10 }
  0x3e   : > { %p309_p12 = pneg %p308_p11  ;;  %p314_p9 = scmp.lt.s32.totalorder %s312_s4, %s306_s2 }
  0x40   : > { %p315_p1 = por %p314_p9, %p313_p4 }
  0x42   : > { %p316_p3 = pnand %p315_p1, %p309_p12 }
  0x44   : > { %319 = shalt.err (!%p316_p3)
}
  0x45   : > { %s320_s5 = scalar_lea.hbm %s504_s30, 128  ;;  %s324_s14 = scalar_lea.hbm %s546_s1, 384 }
  0x46   : > { %p321_p5 = scmp.ne.s32.totalorder %s504_s30, %s320_s5  ;;  %p325_p13 = scmp.lt.u32.totalorder %s504_s30, %s546_s1 }
  0x47   : > { %p326_p0 = scmp.lt.u32.totalorder %s324_s14, %s320_s5  ;;  %p328_p6 = scmp.lt.u32.totalorder %s320_s5, %s504_s30 }
  0x48   : > { %p322_p7 = pnand %p321_p5, %p555_p10 }
  0x49   : > { %p327_p2 = por %p326_p0, %p325_p13 }
  0x4a   : > { %p323_p8 = pneg %p322_p7 }
  0x4b   : > { %p329_p11 = por %p328_p6, %p327_p2 }
  0x4d   : > { %p330_p12 = pnand %p329_p11, %p323_p8 }
  0x4f   : > { %333 = shalt.err (!%p330_p12)
}
  0x50   : > { %232 = dma.vmem_to_hbm [thread:$0]  (%p555_p10), %s499_s26, 128, %s504_s30, %s135_s17  }
  0x51 PF: > { %p243_p4 = scmp.ge.s32.totalorder %s372_s9, 2  ;;  %s160_s21 = sand.u32 1, %s360_s6  }
  0x52   : > { %p556_p9 = scmp.ne.s32.totalorder %s551_s19, 0  ;;  %s161_s22 = scalar_lea.sflag [#allocation4], %s160_s21 }
  0x54   : > { %p239_p1 = pnand %p243_p4, %p556_p9 }
  0x56   : > { %355 = dma.done.wait (!%p239_p1), %s161_s22, 128  }
  0x57   : > { %357 = vsyncadd (!%p239_p1), %s161_s22, 4294967168  ;;  %p14_p3 = scmp.ge.s32.totalorder %s411_s12, 5   ;;  %s557_s6 = smov %s364_s7 }
  0x58   : > { %s558_s7 = smov %s368_s8  ;;  %s559_s8 = smov %s423_s15 }
  0x59   : > { %s560_s9 = smov %s411_s12  ;;  %16 = sbr.rel (!%p14_p3) target bundleno = 5 (0x5), region = 69 }
  0x60   :  { %166 = vsyncpa [#allocation3], 1 }
  0x61   :  { %168 = vsyncpa [#allocation3 + $0x1], 1 }
  0x62   :  { %169 = vsyncpa [#allocation4], 1 }
  0x63   :  { %171 = vsyncpa [#allocation4 + $0x1], 1 }

// kernel: tpu_custom_call.1
= control target key start
LH: loop header
LB: loop body
LE: loop exit
PB: predicated region body
PF: predicated region fallthrough
CT: control target
= control target key end

     0   :  { %6 = vsyncpa [#allocation3], 0  ;;  %s134_s0 = inlined_call_operand.hbm [shape: f32[16,128], index: 0, kind: input, shape index: {}]   ;;  %s135_s1 = inlined_call_operand.hbm [shape: f32[16,128], index: 1, kind: output, shape index: {}]  }
   0x1   :  { %7 = vsyncpa [#allocation4], 0  ;;  %s96_s6 = smov [#allocation2]   ;;  %s48_s10 = scalar_lea.hbm %s134_s0, 256 }
   0x2   :  { %s13_s7 = sshll.u32 %s96_s6, 4  ;;  %p49_p0 = scmp.ne.s32.totalorder %s134_s0, %s48_s10  ;;  %s14_s7 = int_to_ptr.vmem [resolvable:$true] %s13_s7 }
   0x3   :  { %p52_p1 = scmp.lt.u32.totalorder %s48_s10, %s134_s0 }
   0x5   :  { %p54_p2 = pnand %p52_p1, %p49_p0 }
   0x7   :  { %57 = shalt.err (!%p54_p2)
}
   0x8   :  { %s58_s15 = scalar_lea.vmem %s14_s7, 256  ;;  %p63_p4 = scmp.lt.s32.totalorder %s14_s7, %s14_s7 }
   0x9   :  { %p59_p3 = scmp.ne.s32.totalorder %s14_s7, %s58_s15  ;;  %p64_p5 = scmp.lt.s32.totalorder %s58_s15, %s58_s15 }
   0xb   :  { %p65_p6 = por %p64_p5, %p63_p4 }
   0xd   :  { %p66_p7 = pnand %p65_p6, %p59_p3 }
   0xf   :  { %69 = shalt.err (!%p66_p7)
}
  0x10   :  { %s97_s16 = smov 128   ;;  %s98_s17 = smov 8  }
  0x11   :  { %19 = dma.hbm_to_vmem [thread:$0]  %s134_s0, 256, %s14_s7, [#allocation3], %s97_s16, %s97_s16, %s98_s17  }
  0x12   :  { %92 = dma.done.wait [#allocation3], 256  }
  0x13   :  { %93 = vsyncadd [#allocation3], 4294967040  ;;  %s99_s20 = smov [#allocation5]   ;;  %v23_v0 = vld [vmem:[#allocation2] sm:$0xff]  ;;  %v24_v1 = vld [vmem:[#allocation2 + $0x8] sm:$0xff] }
  0x14   :  { %s32_s21 = sshll.u32 %s99_s20, 4  ;;  %25 = vst [vmem:[#allocation5] sm:$0xff] %v23_v0  ;;  %26 = vst [vmem:[#allocation5 + $0x8] sm:$0xff] %v24_v1  ;;  %s33_s21 = int_to_ptr.vmem [resolvable:$true] %s32_s21 }
  0x15   :  { %s70_s22 = scalar_lea.vmem %s33_s21, 256  ;;  %p75_p9 = scmp.lt.s32.totalorder %s33_s21, %s33_s21 }
  0x16   :  { %p71_p8 = scmp.ne.s32.totalorder %s33_s21, %s70_s22  ;;  %p76_p10 = scmp.lt.s32.totalorder %s70_s22, %s70_s22 }
  0x18   :  { %p77_p11 = por %p76_p10, %p75_p9 }
  0x1a   :  { %p78_p12 = pnand %p77_p11, %p71_p8 }
  0x1c   :  { %81 = shalt.err (!%p78_p12)
}
  0x1d   :  { %s82_s0 = scalar_lea.hbm %s135_s1, 256 }
  0x1e   :  { %p83_p13 = scmp.ne.s32.totalorder %s135_s1, %s82_s0  ;;  %p86_p0 = scmp.lt.u32.totalorder %s82_s0, %s135_s1 }
  0x20   :  { %p88_p1 = pnand %p86_p0, %p83_p13 }
  0x22   :  { %91 = shalt.err (!%p88_p1)
}
  0x23   :  { %38 = dma.vmem_to_hbm [thread:$0]  %s33_s21, 256, %s135_s1, [#allocation4], %s97_s16, %s97_s16, %s98_s17  }
  0x24   :  { %94 = dma.done.wait [#allocation4], 256  }
  0x25   :  { %95 = vsyncadd [#allocation4], 4294967040 }
  0x26   :  { %42 = vsyncpa [#allocation3], 1 }
  0x27   :  { %43 = vsyncpa [#allocation4], 1 }

</bundles_post_ra>
